<compile_context>
chip_gen: v7x
topology: tpu7x:2x2x1
jax: 0.10.0
libtpu: 0.0.40
codegen_flags: <defaults>
</compile_context>

<pallas_src>
import math

import jax
import jax.numpy as jnp
from jax.experimental import pallas as pl
from jax.experimental.pallas import tpu as pltpu

IN, H1, H2, OUT = 5, 128, 32, 2       # layer sizes from the PyTorch module
DEFAULT_BLOCK_ROWS = 1024             # rows per grid step (multiple of 16)


def _round_up(n, m):
    return ((n + m - 1) // m) * m


# ---------------------------------------------------------------------------
# Fused Pallas kernel: (BM, 5) row tile -> full MLP -> softmax -> (BM, 2)
# ---------------------------------------------------------------------------
def _mlp_kernel(x_ref, w1_ref, b1_ref, w2_ref, b2_ref, w3_ref, b3_ref, o_ref):
    x = x_ref[...]                                                    # (BM, 5)
    h1 = jnp.tanh(
        jnp.dot(x, w1_ref[...], preferred_element_type=jnp.float32)
        + b1_ref[...])                                                # (BM, 128)
    h2 = jnp.tanh(
        jnp.dot(h1, w2_ref[...], preferred_element_type=jnp.float32)
        + b2_ref[...])                                                # (BM, 32)
    logits = (
        jnp.dot(h2, w3_ref[...], preferred_element_type=jnp.float32)
        + b3_ref[...])                                                # (BM, 2)

    # 2-class softmax on the real lanes only (no padded-lane EUP work).
    m = jnp.max(logits, axis=-1, keepdims=True)
    e = jnp.exp(logits - m)
    denom = jnp.sum(e, axis=-1, keepdims=True)
    o_ref[...] = (e * pl.reciprocal(denom, approx=False)).astype(o_ref.dtype)


# ---------------------------------------------------------------------------
# Parameter handling (PyTorch nn.Linear default uniform init)
# ---------------------------------------------------------------------------
def init_params(key):
    """Matches nn.Linear default init: U(-1/sqrt(fan_in), 1/sqrt(fan_in))."""
    def linear_init(k, out_f, in_f):
        kw, kb = jax.random.split(k)
        bound = 1.0 / math.sqrt(in_f)
        w = jax.random.uniform(kw, (out_f, in_f), jnp.float32, -bound, bound)
        b = jax.random.uniform(kb, (out_f,), jnp.float32, -bound, bound)
        return w, b

    k1, k2, k3 = jax.random.split(key, 3)
    w1, b1 = linear_init(k1, H1, IN)
    w2, b2 = linear_init(k2, H2, H1)
    w3, b3 = linear_init(k3, OUT, H2)
    return dict(w1=w1, b1=b1, w2=w2, b2=b2, w3=w3, b3=b3)


def prepare_params(params):
    """One-time prep (hoisted out of the forward): transpose weights to
    (in, out) layout and give biases a (1, out) shape.  No lane padding."""
    return (jnp.asarray(params["w1"].T, jnp.float32),       # (5, 128)
            params["b1"].reshape(1, H1).astype(jnp.float32),
            jnp.asarray(params["w2"].T, jnp.float32),        # (128, 32)
            params["b2"].reshape(1, H2).astype(jnp.float32),
            jnp.asarray(params["w3"].T, jnp.float32),        # (32, 2)
            params["b3"].reshape(1, OUT).astype(jnp.float32))


# ---------------------------------------------------------------------------
# Wrapper: view(-1, 5), tile rows, one fused pallas_call
# ---------------------------------------------------------------------------
def toy_model_forward(x, prepared, block_rows=DEFAULT_BLOCK_ROWS):
    w1, b1, w2, b2, w3, b3 = prepared

    x2 = x.reshape(-1, IN).astype(jnp.float32)            # PyTorch .view(-1, 5)
    M = x2.shape[0]

    BM = min(block_rows, _round_up(M, 8))                  # rows per grid step
    Mp = _round_up(M, BM)
    if Mp != M:                                            # row-only padding
        x2 = jnp.pad(x2, ((0, Mp - M), (0, 0)))

    out = pl.pallas_call(
        _mlp_kernel,
        out_shape=jax.ShapeDtypeStruct((Mp, OUT), jnp.float32),
        grid=(Mp // BM,),
        in_specs=[
            pl.BlockSpec((BM, IN), lambda i: (i, 0)),      # x rows (last dim = full)
            pl.BlockSpec((IN, H1), lambda i: (0, 0)),      # w1 (5,128)
            pl.BlockSpec((1, H1), lambda i: (0, 0)),       # b1
            pl.BlockSpec((H1, H2), lambda i: (0, 0)),      # w2 (128,32)
            pl.BlockSpec((1, H2), lambda i: (0, 0)),       # b2
            pl.BlockSpec((H2, OUT), lambda i: (0, 0)),     # w3 (32,2)
            pl.BlockSpec((1, OUT), lambda i: (0, 0)),      # b3
        ],
        out_specs=pl.BlockSpec((BM, OUT), lambda i: (i, 0)),
        compiler_params=pltpu.CompilerParams(
            dimension_semantics=("parallel",),             # megacore row sharding
            vmem_limit_bytes=32 * 1024 * 1024),
    )(x2, w1, b1, w2, b2, w3, b3)

    return out if Mp == M else out[:M]


# ---------------------------------------------------------------------------
def _reference(x, params):
    x2 = x.reshape(-1, IN).astype(jnp.float32)
    h1 = jnp.tanh(x2 @ params["w1"].T + params["b1"])
    h2 = jnp.tanh(h1 @ params["w2"].T + params["b2"])
    return jax.nn.softmax(h2 @ params["w3"].T + params["b3"], axis=-1)


if __name__ == "__main__":
    key = jax.random.PRNGKey(0)
    kx, kx2, kp = jax.random.split(key, 3)

    params = init_params(kp)
    prepared = prepare_params(params)                       # hoisted, done once

    fwd = jax.jit(toy_model_forward, static_argnames=("block_rows",))

    # Any shape whose elements flatten to multiples of 5 works (view(-1, 5)).
    x = jax.random.normal(kx, (2, 8, IN), dtype=jnp.float32)    # -> 16 rows
    y = fwd(x, prepared)
    jax.block_until_ready(y)
    assert y.shape == (16, OUT)
    assert bool(jnp.allclose(y, _reference(x, params), atol=1e-5))
    assert bool(jnp.all(jnp.abs(jnp.sum(y, axis=-1) - 1.0) < 1e-5))

    # Exercise the multi-step grid path (grid=2) with a small block override.
    y_tiled = fwd(x, prepared, block_rows=8)
    jax.block_until_ready(y_tiled)
    assert bool(jnp.allclose(y_tiled, _reference(x, params), atol=1e-5))

    # Exercise the row-padding path (M = 7, not a multiple of 8).
    x3 = jax.random.normal(kx2, (7, IN), dtype=jnp.float32)
    y3 = fwd(x3, prepared)
    jax.block_until_ready(y3)
    assert y3.shape == (7, OUT)
    assert bool(jnp.allclose(y3, _reference(x3, params), atol=1e-5))

    print("KERNEL_OK")
</pallas_src>

<mosaic_0001>
module attributes {stable_mosaic.version = 11 : i64} {
  func.func @_mlp_kernel(%arg0: i32, %arg1: memref<16x5xf32, #tpu.memory_space<vmem>>, %arg2: memref<5x128xf32, #tpu.memory_space<vmem>>, %arg3: memref<1x128xf32, #tpu.memory_space<vmem>>, %arg4: memref<128x32xf32, #tpu.memory_space<vmem>>, %arg5: memref<1x32xf32, #tpu.memory_space<vmem>>, %arg6: memref<32x2xf32, #tpu.memory_space<vmem>>, %arg7: memref<1x2xf32, #tpu.memory_space<vmem>>, %arg8: memref<16x2xf32, #tpu.memory_space<vmem>>) attributes {dimension_semantics = [#tpu.dimension_semantics<parallel>], iteration_bounds = array<i64: 1>, scalar_prefetch = 0 : i64, scratch_operands = 0 : i64, tpu.core_type = #tpu.core_type<tc>, window_params = [{transform_indices = @transform_0, window_bounds = array<i64: 16, 5>}, {pipeline_mode = #tpu.pipeline_mode<synchronous>, transform_indices = @transform_1, window_bounds = array<i64: 5, 128>}, {pipeline_mode = #tpu.pipeline_mode<synchronous>, transform_indices = @transform_2, window_bounds = array<i64: 1, 128>}, {pipeline_mode = #tpu.pipeline_mode<synchronous>, transform_indices = @transform_3, window_bounds = array<i64: 128, 32>}, {pipeline_mode = #tpu.pipeline_mode<synchronous>, transform_indices = @transform_4, window_bounds = array<i64: 1, 32>}, {pipeline_mode = #tpu.pipeline_mode<synchronous>, transform_indices = @transform_5, window_bounds = array<i64: 32, 2>}, {pipeline_mode = #tpu.pipeline_mode<synchronous>, transform_indices = @transform_6, window_bounds = array<i64: 1, 2>}, {transform_indices = @transform_7, window_bounds = array<i64: 16, 2>}]} {
    %c0 = arith.constant 0 : index
    %c0_0 = arith.constant 0 : index
    %0 = vector.load %arg1[%c0, %c0_0] : memref<16x5xf32, #tpu.memory_space<vmem>>, vector<16x5xf32>
    %c0_1 = arith.constant 0 : index
    %c0_2 = arith.constant 0 : index
    %1 = vector.load %arg2[%c0_1, %c0_2] : memref<5x128xf32, #tpu.memory_space<vmem>>, vector<5x128xf32>
    %cst = arith.constant dense<0.000000e+00> : vector<16x128xf32>
    %2 = tpu.matmul %0, %1, %cst {dimension_numbers = #tpu.dot_dimension_numbers<[1], [0], [0], [1], [0, 0, 1, 1], [], []>} : vector<16x5xf32>, vector<5x128xf32>, vector<16x128xf32> -> vector<16x128xf32>
    %c0_3 = arith.constant 0 : index
    %c0_4 = arith.constant 0 : index
    %3 = vector.load %arg3[%c0_3, %c0_4] : memref<1x128xf32, #tpu.memory_space<vmem>>, vector<1x128xf32>
    %4 = vector.broadcast %3 : vector<1x128xf32> to vector<16x128xf32>
    %5 = arith.addf %2, %4 : vector<16x128xf32>
    %6 = math.tanh %5 : vector<16x128xf32>
    %c0_5 = arith.constant 0 : index
    %c0_6 = arith.constant 0 : index
    %7 = vector.load %arg4[%c0_5, %c0_6] : memref<128x32xf32, #tpu.memory_space<vmem>>, vector<128x32xf32>
    %cst_7 = arith.constant dense<0.000000e+00> : vector<16x32xf32>
    %8 = tpu.matmul %6, %7, %cst_7 {dimension_numbers = #tpu.dot_dimension_numbers<[1], [0], [0], [1], [0, 0, 1, 1], [], []>} : vector<16x128xf32>, vector<128x32xf32>, vector<16x32xf32> -> vector<16x32xf32>
    %c0_8 = arith.constant 0 : index
    %c0_9 = arith.constant 0 : index
    %9 = vector.load %arg5[%c0_8, %c0_9] : memref<1x32xf32, #tpu.memory_space<vmem>>, vector<1x32xf32>
    %10 = vector.broadcast %9 : vector<1x32xf32> to vector<16x32xf32>
    %11 = arith.addf %8, %10 : vector<16x32xf32>
    %12 = math.tanh %11 : vector<16x32xf32>
    %c0_10 = arith.constant 0 : index
    %c0_11 = arith.constant 0 : index
    %13 = vector.load %arg6[%c0_10, %c0_11] : memref<32x2xf32, #tpu.memory_space<vmem>>, vector<32x2xf32>
    %cst_12 = arith.constant dense<0.000000e+00> : vector<16x2xf32>
    %14 = tpu.matmul %12, %13, %cst_12 {dimension_numbers = #tpu.dot_dimension_numbers<[1], [0], [0], [1], [0, 0, 1, 1], [], []>} : vector<16x32xf32>, vector<32x2xf32>, vector<16x2xf32> -> vector<16x2xf32>
    %c0_13 = arith.constant 0 : index
    %c0_14 = arith.constant 0 : index
    %15 = vector.load %arg7[%c0_13, %c0_14] : memref<1x2xf32, #tpu.memory_space<vmem>>, vector<1x2xf32>
    %16 = vector.broadcast %15 : vector<1x2xf32> to vector<16x2xf32>
    %17 = arith.addf %14, %16 : vector<16x2xf32>
    %cst_15 = arith.constant dense<0xFF800000> : vector<16xf32>
    %18 = vector.multi_reduction <maximumf>, %17, %cst_15 [1] : vector<16x2xf32> to vector<16xf32>
    %19 = vector.shape_cast %18 : vector<16xf32> to vector<16x1xf32>
    %20 = vector.broadcast %19 : vector<16x1xf32> to vector<16x2xf32>
    %21 = arith.subf %17, %20 : vector<16x2xf32>
    %22 = math.exp %21 : vector<16x2xf32>
    %cst_16 = arith.constant dense<0.000000e+00> : vector<16xf32>
    %23 = vector.multi_reduction <add>, %22, %cst_16 [1] : vector<16x2xf32> to vector<16xf32>
    %24 = vector.shape_cast %23 : vector<16xf32> to vector<16x1xf32>
    %25 = tpu.reciprocal %24 : vector<16x1xf32> -> vector<16x1xf32>
    %26 = vector.broadcast %25 : vector<16x1xf32> to vector<16x2xf32>
    %27 = arith.mulf %22, %26 : vector<16x2xf32>
    %c0_17 = arith.constant 0 : index
    %c0_18 = arith.constant 0 : index
    %28 = vector.load %arg8[%c0_17, %c0_18] : memref<16x2xf32, #tpu.memory_space<vmem>>, vector<16x2xf32>
    tpu.vector_store %arg8[%c0_17, %c0_18], %27 {strides = array<i32>} : memref<16x2xf32, #tpu.memory_space<vmem>>, vector<16x2xf32>,
    return
  }
  func.func @transform_0(%arg0: i32) -> (i32, i32) {
    %c0_i32 = arith.constant 0 : i32
    %c0_i32_0 = arith.constant 0 : i32
    return %arg0, %c0_i32 : i32, i32
  }
  func.func @transform_1(%arg0: i32) -> (i32, i32) {
    %c0_i32 = arith.constant 0 : i32
    %c0_i32_0 = arith.constant 0 : i32
    %c0_i32_1 = arith.constant 0 : i32
    return %c0_i32, %c0_i32_0 : i32, i32
  }
  func.func @transform_2(%arg0: i32) -> (i32, i32) {
    %c0_i32 = arith.constant 0 : i32
    %c0_i32_0 = arith.constant 0 : i32
    %c0_i32_1 = arith.constant 0 : i32
    return %c0_i32, %c0_i32_0 : i32, i32
  }
  func.func @transform_3(%arg0: i32) -> (i32, i32) {
    %c0_i32 = arith.constant 0 : i32
    %c0_i32_0 = arith.constant 0 : i32
    %c0_i32_1 = arith.constant 0 : i32
    return %c0_i32, %c0_i32_0 : i32, i32
  }
  func.func @transform_4(%arg0: i32) -> (i32, i32) {
    %c0_i32 = arith.constant 0 : i32
    %c0_i32_0 = arith.constant 0 : i32
    %c0_i32_1 = arith.constant 0 : i32
    return %c0_i32, %c0_i32_0 : i32, i32
  }
  func.func @transform_5(%arg0: i32) -> (i32, i32) {
    %c0_i32 = arith.constant 0 : i32
    %c0_i32_0 = arith.constant 0 : i32
    %c0_i32_1 = arith.constant 0 : i32
    return %c0_i32, %c0_i32_0 : i32, i32
  }
  func.func @transform_6(%arg0: i32) -> (i32, i32) {
    %c0_i32 = arith.constant 0 : i32
    %c0_i32_0 = arith.constant 0 : i32
    %c0_i32_1 = arith.constant 0 : i32
    return %c0_i32, %c0_i32_0 : i32, i32
  }
  func.func @transform_7(%arg0: i32) -> (i32, i32) {
    %c0_i32 = arith.constant 0 : i32
    %c0_i32_0 = arith.constant 0 : i32
    return %arg0, %c0_i32 : i32, i32
  }
}

</mosaic_0001>

<bundles_post_ra>
// kernel: toy_model_forward.1
= control target key start
LH: loop header
LB: loop body
LE: loop exit
PB: predicated region body
PF: predicated region fallthrough
CT: control target
= control target key end

     0   :  { %vm43_vm0 = vcmask 1044480   ;;  %vm36_vm1 = vcmask 39936   ;;  %vm235_vm2 = vcmask 261120   ;;  %vm317_vm3 = vcmask 15360   ;;  %s618_s1 = inlined_call_operand.vmem [shape: f32[5,128], index: 1, kind: input, shape index: {}]   ;;  %s619_s0 = inlined_call_operand.vmem [shape: f32[16,5], index: 0, kind: input, shape index: {}]   ;;  %s620_s3 = inlined_call_operand.vmem [shape: f32[128,32], index: 3, kind: input, shape index: {}]   ;;  %s621_s2 = inlined_call_operand.vmem [shape: f32[1,128], index: 2, kind: input, shape index: {}]   ;;  %s622_s5 = inlined_call_operand.vmem [shape: f32[32,2], index: 5, kind: input, shape index: {}]   ;;  %s623_s4 = inlined_call_operand.vmem [shape: f32[1,32], index: 4, kind: input, shape index: {}]   ;;  %s624_s6 = inlined_call_operand.vmem [shape: f32[1,2], index: 6, kind: input, shape index: {}]   ;;  %s625_s7 = inlined_call_operand.vmem [shape: f32[16,2], index: 7, kind: output, shape index: {}]  }
   0x1   :  { %v28_v0 = vld [vmem:[%s618_s1] sm:$0x1f]  ;;  %v27_v2 = vld [vmem:[%s619_s0 + $0x8] sm:$0xff]  ;;  %v126_v5 = vld [vmem:[%s620_s3 + $0x10] sm:$0xff] }
   0x2   :  { %v26_v1 = vld [vmem:[%s619_s0] sm:$0xff]  ;;  %381 = vmatprep.subr.msk.mxu0 %vm43_vm0, %v28_v0  ;;  %v125_v4 = vld [vmem:[%s620_s3 + $0x8] sm:$0xff]  ;;  %v127_v7 = vld [vmem:[%s620_s3 + $0x18] sm:$0xff] }
   0x3   :  { %383 = vmatprep.mubr.msk.f32.mxu0 %vm36_vm1, %v26_v1  ;;  %v124_v3 = vld [vmem:[%s620_s3] sm:$0xff]  ;;  %382 = vmatpush3.msk.msra.mxu0 %vm43_vm0, %v28_v0  ;;  %v436_v8 = vpack.c.bf16 %v127_v7, %v126_v5  ;;  %v129_v10 = vld [vmem:[%s620_s3 + $0x28] sm:$0xff]  ;;  %v130_v12 = vld [vmem:[%s620_s3 + $0x30] sm:$0xff] }
   0x4   :  { %v432_v6 = vpack.c.bf16 %v125_v4, %v124_v3  ;;  %384 = vmatmul.mubr.msk.f32.vlgmr.msra.gmra.mrb[0].mxu0 %vm36_vm1, %v27_v2  ;;  %v128_v9 = vld [vmem:[%s620_s3 + $0x20] sm:$0xff]  ;;  %v131_v13 = vld [vmem:[%s620_s3 + $0x38] sm:$0xff]  ;;  %v133_v16 = vld [vmem:[%s620_s3 + $0x48] sm:$0xff] }
   0x5   :  { %v440_v11 = vpack.c.bf16 %v129_v10, %v128_v9  ;;  %v444_v14 = vpack.c.bf16 %v131_v13, %v130_v12  ;;  %v132_v15 = vld [vmem:[%s620_s3 + $0x40] sm:$0xff]  ;;  %v134_v18 = vld [vmem:[%s620_s3 + $0x50] sm:$0xff]  ;;  %v135_v19 = vld [vmem:[%s620_s3 + $0x58] sm:$0xff] }
   0x6   :  { %433 = vmatprep.subr.bf16.mxu1 %v432_v6  ;;  %v448_v17 = vpack.c.bf16 %v133_v16, %v132_v15  ;;  %v452_v20 = vpack.c.bf16 %v135_v19, %v134_v18  ;;  %v136_v21 = vld [vmem:[%s620_s3 + $0x60] sm:$0xff]  ;;  %v137_v22 = vld [vmem:[%s620_s3 + $0x68] sm:$0xff]  ;;  %v138_v23 = vld [vmem:[%s620_s3 + $0x70] sm:$0xff] }
   0x7   :  { %435 = vmatpush3.bf16.msra.mxu1 %v432_v6  ;;  %v456_v24 = vpack.c.bf16 %v137_v22, %v136_v21  ;;  %v139_v25 = vld [vmem:[%s620_s3 + $0x78] sm:$0xff]  ;;  %v346_v27 = vld [vmem:[%s621_s2] ss:$0 sm:$0xff]  ;;  %v225_v35 = vld [vmem:[%s622_s5 + $0x8] sm:$0xff] }
   0x8   :  { %437 = vmatprep.subr.bf16.mxu1 %v436_v8  ;;  %v460_v26 = vpack.c.bf16 %v139_v25, %v138_v23  ;;  %v224_v34 = vld [vmem:[%s622_s5] sm:$0xff]  ;;  %v226_v36 = vld [vmem:[%s622_s5 + $0x10] sm:$0xff]  ;;  %v227_v38 = vld [vmem:[%s622_s5 + $0x18] sm:$0xff] }
   0x9   :  { %v464_v37 = vpack.c.bf16 %v225_v35, %v224_v34  ;;  %v468_v39 = vpack.c.bf16 %v227_v38, %v226_v36  ;;  %v350_v40 = vld [vmem:[%s623_s4] ss:$0 sm:$0xff] }
   0xa   :  { %v351_v47 = vld [vmem:[%s624_s6] ss:$0 sm:$0xff] }
   0xb   :  { %439 = vmatpush3.bf16.msra.mxu1 %v436_v8  ;;  %465 = vmatprep.subr.bf16.mxu0 %v464_v37 }
   0xc   :  { %441 = vmatprep.subr.bf16.mxu1 %v440_v11  ;;  %467 = vmatpush3.bf16.msra.mxu0 %v464_v37 }
   0xd   :  { %469 = vmatprep.subr.bf16.mxu0 %v468_v39 }
   0xf   :  { %443 = vmatpush3.bf16.msra.mxu1 %v440_v11 }
  0x10   :  { %445 = vmatprep.subr.bf16.mxu1 %v444_v14  ;;  %471 = vmatpush3.bf16.msra.mxu0 %v468_v39 }
  0x13   :  { %447 = vmatpush3.bf16.msra.mxu1 %v444_v14 }
  0x14   :  { %449 = vmatprep.subr.bf16.mxu1 %v448_v17 }
  0x17   :  { %451 = vmatpush3.bf16.msra.mxu1 %v448_v17 }
  0x18   :  { %453 = vmatprep.subr.bf16.mxu1 %v452_v20 }
  0x1b   :  { %455 = vmatpush3.bf16.msra.mxu1 %v452_v20 }
  0x1c   :  { %457 = vmatprep.subr.bf16.mxu1 %v456_v24 }
  0x1f   :  { %459 = vmatpush3.bf16.msra.mxu1 %v456_v24 }
  0x20   :  { %461 = vmatprep.subr.bf16.mxu1 %v460_v26 }
  0x23   :  { %463 = vmatpush3.bf16.msra.mxu1 %v460_v26 }
  0xd7   :  { %v385_v28 = vpop.f32.mrb[0].mxu0 }
  0xd8   :  { %v119_v29 = vadd.f32 %v385_v28, %v346_v27  ;;  %v113_v30 = vpop.f32.mrb[1].mxu0 }
  0xd9   :  { %v114_v31 = vadd.f32 %v346_v27, %v113_v30 }
  0xdb   :  { %472 = vtanh.f32 %v114_v31 }
  0xdc   :  { %474 = vtanh.f32 %v119_v29 }
  0xe5   :  { %v473_v32 = vpop.eup %472 }
  0xe6   :  { %v475_v33 = vpop.eup %474  ;;  %418 = vmatprep.mubr.f32.mxu1 %v473_v32 }
  0xe7   :  { %419 = vmatmul.mubr.f32.vlgmr.msra.gmra.mrb[0].mxu1 %v475_v33 }
 0x1ba   :  { %v420_v41 = vpop.f32.mrb[0].mxu1 }
 0x1bb   :  { %v219_v42 = vadd.f32 %v420_v41, %v350_v40  ;;  %v213_v43 = vpop.f32.mrb[1].mxu1 }
 0x1bc   :  { %v214_v44 = vadd.f32 %v350_v40, %v213_v43 }
 0x1be   :  { %476 = vtanh.f32 %v214_v44 }
 0x1bf   :  { %478 = vtanh.f32 %v219_v42 }
 0x1c8   :  { %v477_v45 = vpop.eup %476 }
 0x1c9   :  { %v479_v46 = vpop.eup %478  ;;  %429 = vmatprep.mubr.msk.f32.mxu0 %vm235_vm2, %v477_v45 }
 0x1ca   :  { %430 = vmatmul.mubr.msk.f32.vlgmr.msra.gmra.mrb[2].mxu0 %vm235_vm2, %v479_v46 }
 0x29d   :  { %v431_v48 = vpop.f32.mrb[2].mxu0 }
 0x29e   :  { %v308_v49 = vpop.f32.mrb[3].mxu0  ;;  %v314_v51 = vadd.f32 %v431_v48, %v351_v47 }
 0x29f   :  { %v309_v50 = vadd.f32 %v351_v47, %v308_v49 }
 0x2a0   :  { %v321_v53 = vsel %vm317_vm3, %v314_v51, -inf }
 0x2a1   :  { %v318_v52 = vsel %vm317_vm3, %v309_v50, -inf }
 0x2a2   :  { %319 = vmax.xlane.f32.xlu0 %v318_v52 }
 0x2a6   :  { %322 = vmax.xlane.f32.xlu0 %v321_v53 }
 0x32f   :  { %v320_v54 = vpop.xlane.xlu0 %319 }
 0x330   :  { %v324_v55 = vsub.f32 %v309_v50, %v320_v54 }
 0x332   :  { %v326_v56 = vmul.f32 1.442695, %v324_v55 }
 0x333   :  { %v323_v57 = vpop.xlane.xlu0 %322 }
 0x334   :  { %480 = vpow2.f32 %v326_v56  ;;  %v325_v58 = vsub.f32 %v314_v51, %v323_v57 }
 0x336   :  { %v328_v59 = vmul.f32 1.442695, %v325_v58 }
 0x338   :  { %482 = vpow2.f32 %v328_v59 }
 0x33e   :  { %v481_v60 = vpop.eup %480 }
 0x33f   :  { %v330_v61 = vsel %vm317_vm3, %v481_v60, 0.0 }
 0x340   :  { %331 = vadd.xlane.f32.xlu1 %v330_v61 }
 0x342   :  { %v483_v62 = vpop.eup %482 }
 0x343   :  { %v333_v63 = vsel %vm317_vm3, %v483_v62, 0.0 }
 0x344   :  { %334 = vadd.xlane.f32.xlu1 %v333_v63 }
 0x3cd   :  { %v332_v0 = vpop.xlane.xlu1 %331 }
 0x3ce   :  { %484 = vrcp.f32 %v332_v0 }
 0x3d1   :  { %v335_v1 = vpop.xlane.xlu1 %334 }
 0x3d2   :  { %486 = vrcp.f32 %v335_v1 }
 0x3d8   :  { %v485_v2 = vpop.eup %484 }
 0x3d9   :  { %v338_v3 = vmul.f32 %v485_v2, %v481_v60 }
 0x3db   :  { %340 = vst.msk [vmem:[%s625_s7] sm:$0xff] %vm317_vm3, %v338_v3 }
 0x3dc   :  { %v487_v4 = vpop.eup %486 }
 0x3dd   :  { %v339_v5 = vmul.f32 %v487_v4, %v483_v62 }
 0x3df   :  { %341 = vst.msk [vmem:[%s625_s7 + $0x8] sm:$0xff] %vm317_vm3, %v339_v5 }

</bundles_post_ra>
